<compile_context>
chip_gen: v6e
topology: v6e:2x2x1
jax: 0.10.0
libtpu: 0.0.40
codegen_flags: <defaults>
</compile_context>

<pallas_src>
import numpy as np
import jax
import jax.numpy as jnp
from jax.experimental import pallas as pl
from jax.experimental.pallas import tpu as pltpu


def _round_up(x: int, m: int) -> int:
    return (x + m - 1) // m * m


def _subgrid_accum_kernel(x_ref, o_ref):
    """Depthwise 4x4 all-ones conv on one block of (cb) feature maps.

    x_ref: (cb, Ho+3, Wo+3)  zero-padded input maps
    o_ref: (cb, Ho,  Wo)     output maps (Ho mult of 8, Wo mult of 128)
    """
    cb, ho, wo = o_ref.shape
    x = x_ref[...]                                    # (cb, ho+3, wo+3) f32

    # Separable 4x4 all-ones conv.
    # Lane (width) pass: 4-tap running sum along the last axis.
    r = (x[:, :, 0:wo] + x[:, :, 1:wo + 1]) + (x[:, :, 2:wo + 2] + x[:, :, 3:wo + 3])
    # Sublane (height) pass: 4-tap running sum along the second-to-last axis.
    o_ref[...] = (r[:, 0:ho, :] + r[:, 1:ho + 1, :]) + (r[:, 2:ho + 2, :] + r[:, 3:ho + 3, :])


@jax.jit
def subgrid_accumulation(x: jnp.ndarray) -> jnp.ndarray:
    """x: (B, 8, H, W) float32 -> (B, 8, H+1, W+1) float32."""
    B, C, H, W = x.shape
    assert C == 8, "SubGridAccumulationLayer expects 8 channels"

    # Output-aligned padded sizes (lane-dense / sublane-dense output block).
    Ho = _round_up(H + 1, 8)
    Wo = _round_up(W + 1, 128)
    Hin = Ho + 3
    Win = Wo + 3

    N = B * C
    x32 = x.astype(jnp.float32).reshape(N, H, W)
    # Zero padding: 2 rows/cols on top/left (as in the PyTorch conv), the rest
    # of the alignment padding on the bottom/right (extra zeros only produce
    # zeros that are sliced off below).
    xp = jnp.pad(x32, ((0, 0), (2, Hin - H - 2), (2, Win - W - 2)))

    # Block size along the fused (batch*channel) axis: keep double-buffered
    # in+out blocks comfortably below the scoped VMEM limit.
    cb = C
    vmem_budget = 8 * 1024 * 1024
    while cb > 1 and 2 * 4 * cb * (Hin * Win + Ho * Wo) > vmem_budget:
        cb //= 2
    grid = (N // cb,)

    out = pl.pallas_call(
        _subgrid_accum_kernel,
        out_shape=jax.ShapeDtypeStruct((N, Ho, Wo), jnp.float32),
        grid_spec=pltpu.PrefetchScalarGridSpec(
            num_scalar_prefetch=0,
            grid=grid,
            in_specs=[pl.BlockSpec((cb, Hin, Win), lambda i: (i, 0, 0))],
            out_specs=pl.BlockSpec((cb, Ho, Wo), lambda i: (i, 0, 0)),
        ),
        compiler_params=pltpu.CompilerParams(
            dimension_semantics=("parallel",),
            vmem_limit_bytes=32 * 1024 * 1024,
        ),
    )(xp)

    return out[:, :H + 1, :W + 1].reshape(B, C, H + 1, W + 1)


if __name__ == "__main__":
    key = jax.random.PRNGKey(0)
    B, C, H, W = 2, 8, 16, 16
    x = jax.random.normal(key, (B, C, H, W), dtype=jnp.float32)

    out = jax.block_until_ready(subgrid_accumulation(x))
    assert out.shape == (B, C, H + 1, W + 1)
    assert out.dtype == jnp.float32

    # Pure-JAX reference: depthwise 4x4 all-ones conv, padding=2, no bias.
    xpad = jnp.pad(x, ((0, 0), (0, 0), (2, 2), (2, 2)))
    ref = jnp.zeros((B, C, H + 1, W + 1), jnp.float32)
    for ki in range(4):
        for kj in range(4):
            ref = ref + xpad[:, :, ki:ki + H + 1, kj:kj + W + 1]
    assert jnp.allclose(out, ref, rtol=1e-5, atol=1e-5), "mismatch vs reference"

    print("KERNEL_OK")
</pallas_src>

<mosaic_0001>
module attributes {stable_mosaic.version = 11 : i64} {
  func.func @_subgrid_accum_kernel(%arg0: i32, %arg1: memref<8x27x131xf32, #tpu.memory_space<vmem>>, %arg2: memref<8x24x128xf32, #tpu.memory_space<vmem>>) attributes {dimension_semantics = [#tpu.dimension_semantics<parallel>], iteration_bounds = array<i64: 2>, scalar_prefetch = 0 : i64, scratch_operands = 0 : i64, tpu.core_type = #tpu.core_type<tc>, window_params = [{transform_indices = @transform_0, window_bounds = array<i64: 8, 27, 131>}, {transform_indices = @transform_1, window_bounds = array<i64: 8, 24, 128>}]} {
    %c0 = arith.constant 0 : index
    %c0_0 = arith.constant 0 : index
    %c0_1 = arith.constant 0 : index
    %0 = vector.load %arg1[%c0, %c0_0, %c0_1] : memref<8x27x131xf32, #tpu.memory_space<vmem>>, vector<8x27x131xf32>
    %1 = vector.extract_strided_slice %0 {offsets = [0, 0, 0], sizes = [8, 27, 128], strides = [1, 1, 1]} : vector<8x27x131xf32> to vector<8x27x128xf32>
    %2 = vector.extract_strided_slice %0 {offsets = [0, 0, 1], sizes = [8, 27, 128], strides = [1, 1, 1]} : vector<8x27x131xf32> to vector<8x27x128xf32>
    %3 = arith.addf %1, %2 : vector<8x27x128xf32>
    %4 = vector.extract_strided_slice %0 {offsets = [0, 0, 2], sizes = [8, 27, 128], strides = [1, 1, 1]} : vector<8x27x131xf32> to vector<8x27x128xf32>
    %5 = vector.extract_strided_slice %0 {offsets = [0, 0, 3], sizes = [8, 27, 128], strides = [1, 1, 1]} : vector<8x27x131xf32> to vector<8x27x128xf32>
    %6 = arith.addf %4, %5 : vector<8x27x128xf32>
    %7 = arith.addf %3, %6 : vector<8x27x128xf32>
    %8 = vector.extract_strided_slice %7 {offsets = [0, 0, 0], sizes = [8, 24, 128], strides = [1, 1, 1]} : vector<8x27x128xf32> to vector<8x24x128xf32>
    %9 = vector.extract_strided_slice %7 {offsets = [0, 1, 0], sizes = [8, 24, 128], strides = [1, 1, 1]} : vector<8x27x128xf32> to vector<8x24x128xf32>
    %10 = arith.addf %8, %9 : vector<8x24x128xf32>
    %11 = vector.extract_strided_slice %7 {offsets = [0, 2, 0], sizes = [8, 24, 128], strides = [1, 1, 1]} : vector<8x27x128xf32> to vector<8x24x128xf32>
    %12 = vector.extract_strided_slice %7 {offsets = [0, 3, 0], sizes = [8, 24, 128], strides = [1, 1, 1]} : vector<8x27x128xf32> to vector<8x24x128xf32>
    %13 = arith.addf %11, %12 : vector<8x24x128xf32>
    %14 = arith.addf %10, %13 : vector<8x24x128xf32>
    %c0_2 = arith.constant 0 : index
    %c0_3 = arith.constant 0 : index
    %c0_4 = arith.constant 0 : index
    %15 = vector.load %arg2[%c0_2, %c0_3, %c0_4] : memref<8x24x128xf32, #tpu.memory_space<vmem>>, vector<8x24x128xf32>
    tpu.vector_store %arg2[%c0_2, %c0_3, %c0_4], %14 {strides = array<i32>} : memref<8x24x128xf32, #tpu.memory_space<vmem>>, vector<8x24x128xf32>,
    return
  }
  func.func @transform_0(%arg0: i32) -> (i32, i32, i32) {
    %c0_i32 = arith.constant 0 : i32
    %c0_i32_0 = arith.constant 0 : i32
    %c0_i32_1 = arith.constant 0 : i32
    return %arg0, %c0_i32, %c0_i32_0 : i32, i32, i32
  }
  func.func @transform_1(%arg0: i32) -> (i32, i32, i32) {
    %c0_i32 = arith.constant 0 : i32
    %c0_i32_0 = arith.constant 0 : i32
    %c0_i32_1 = arith.constant 0 : i32
    return %arg0, %c0_i32, %c0_i32_0 : i32, i32, i32
  }
}

</mosaic_0001>

<bundles_post_ra>
// kernel: subgrid_accumulation.1
= control target key start
LH: loop header
LB: loop body
LE: loop exit
PB: predicated region body
PF: predicated region fallthrough
CT: control target
= control target key end

     0   :  { %s1247_s6 = smov 0   ;;  %s1984_s0 = inlined_call_operand.vmem [shape: f32[16,27,131], index: 0, kind: input, shape index: {}]   ;;  %s1985_s1 = inlined_call_operand.vmem [shape: f32[16,24,128], index: 1, kind: output, shape index: {}]  }
   0x1 LB: > { %s1203_s7 = sadd.s32 4294967295, %s1233_s6   ;;  %p1207_p0 = scmp.ge.s32.totalorder %s1233_s6, 1  ;;  %s1233_s6 = sphi %s1247_s6, %s11_s6  }
   0x2   : > { %p89_p1 = scmp.lt.s32.totalorder %s1233_s6, 3 }
   0x4   : > { %p90_p2 = pnand %p1207_p0, %p89_p1 }
   0x6   : > { %93 = sbr.rel (%p90_p2) target bundleno = 399 (0x18f), region = 24 }
   0xb   : > { %s1208_s8 = sshll.u32 %s1203_s7, 3  ;;  %s1235_s13 = smov 127   ;;  %vm381_vm0 = vcmask 1039360   ;;  %vm734_vm1 = vcmask 1031168   ;;  %vm863_vm2 = vcmask 1046528   ;;  %vm1016_vm3 = vcmask 1045504  }
   0xc   : > { %p112_p3 = scmp.lt.s32.totalorder %s1208_s8, 15  ;;  %s1236_s14 = smov 126  }
   0xe   : > { %s2032_s8 = smov (!%p112_p3, %s1208_s8), 15 }
   0xf   : > { %s1215_s9 = sshll.u32 %s2032_s8, 6  ;;  %s1216_s15 = smul.u32 24, %s2032_s8 }
  0x10   : > { %s1261_s12 = scalar_lea.vmem %s1984_s0, %s1215_s9 }
  0x11   : > { %v1264_v0 = vld [vmem:[%s1261_s12 + $0x10] sm:$0xff]  ;;  %v1267_v1 = vld [vmem:[%s1261_s12] sm:$0xff]  ;;  %v1274_v2 = vld [vmem:[%s1261_s12 + $0x18] sm:$0xff]  ;;  %s1855_s18 = scalar_lea.vmem %s1985_s1, %s1216_s15 }
  0x12   : > { %257 = vrot.lane.b32.xlu1 %v1264_v0, %s1235_s13  ;;  %253 = vrot.lane.b32.xlu0 %v1267_v1, %s1235_s13  ;;  %v1277_v3 = vld [vmem:[%s1261_s12 + $0x8] sm:$0xff]  ;;  %v1287_v5 = vld [vmem:[%s1261_s12 + $0x20] sm:$0xff] }
  0x13   : > { %v1284_v4 = vld [vmem:[%s1261_s12 + $0x28] sm:$0xff]  ;;  %v1294_v6 = vld [vmem:[%s1261_s12 + $0x38] sm:$0x7]  ;;  %v1297_v7 = vld [vmem:[%s1261_s12 + $0x30] sm:$0x7] }
  0x14   : > { %v1304_v8 = vld [vmem:[%s1261_s12 + $0x48] sm:$0xff]  ;;  %v1307_v9 = vld [vmem:[%s1261_s12 + $0x40] sm:$0xff]  ;;  %v1314_v10 = vld [vmem:[%s1261_s12 + $0x58] sm:$0xff] }
  0x15   : > { %v1317_v11 = vld [vmem:[%s1261_s12 + $0x50] sm:$0xff]  ;;  %v1324_v12 = vld [vmem:[%s1261_s12 + $0x68] sm:$0xff]  ;;  %v1327_v13 = vld [vmem:[%s1261_s12 + $0x60] sm:$0xff] }
  0x16   : > { %259 = vrot.lane.b32.xlu1 %v1274_v2, %s1235_s13  ;;  %255 = vrot.lane.b32.xlu0 %v1277_v3, %s1235_s13  ;;  %v1334_v14 = vld [vmem:[%s1261_s12 + $0x78] sm:$0x7]  ;;  %v1337_v15 = vld [vmem:[%s1261_s12 + $0x70] sm:$0x7] }
  0x17   : > { %v1344_v16 = vld [vmem:[%s1261_s12 + $0x88] sm:$0xff]  ;;  %v1347_v17 = vld [vmem:[%s1261_s12 + $0x80] sm:$0xff]  ;;  %v1354_v18 = vld [vmem:[%s1261_s12 + $0x98] sm:$0xff] }
  0x18   : > { %v1357_v19 = vld [vmem:[%s1261_s12 + $0x90] sm:$0xff]  ;;  %v1364_v20 = vld [vmem:[%s1261_s12 + $0xa8] sm:$0xff]  ;;  %v1367_v21 = vld [vmem:[%s1261_s12 + $0xa0] sm:$0xff] }
  0x19   : > { %v1374_v22 = vld [vmem:[%s1261_s12 + $0xb8] sm:$0x7]  ;;  %v1377_v23 = vld [vmem:[%s1261_s12 + $0xb0] sm:$0x7]  ;;  %v1384_v24 = vld [vmem:[%s1261_s12 + $0xc8] sm:$0xff] }
  0x1a   : > { %263 = vrot.lane.b32.xlu1 %v1284_v4, %s1235_s13  ;;  %261 = vrot.lane.b32.xlu0 %v1287_v5, %s1235_s13  ;;  %v1387_v25 = vld [vmem:[%s1261_s12 + $0xc0] sm:$0xff]  ;;  %v1394_v26 = vld [vmem:[%s1261_s12 + $0xd8] sm:$0xff] }
  0x1b   : > { %v1397_v27 = vld [vmem:[%s1261_s12 + $0xd0] sm:$0xff]  ;;  %v1404_v28 = vld [vmem:[%s1261_s12 + $0xe8] sm:$0xff]  ;;  %v1407_v29 = vld [vmem:[%s1261_s12 + $0xe0] sm:$0xff] }
  0x1c   : > { %v1414_v30 = vld [vmem:[%s1261_s12 + $0xf8] sm:$0x7]  ;;  %v1417_v31 = vld [vmem:[%s1261_s12 + $0xf0] sm:$0x7]  ;;  %v1424_v32 = vld [vmem:[%s1261_s12 + $0x108] sm:$0xff] }
  0x1d   : > { %v1427_v33 = vld [vmem:[%s1261_s12 + $0x100] sm:$0xff]  ;;  %v1434_v34 = vld [vmem:[%s1261_s12 + $0x118] sm:$0xff]  ;;  %v1437_v35 = vld [vmem:[%s1261_s12 + $0x110] sm:$0xff] }
  0x1e   : > { %267 = vrot.lane.b32.xlu1 %v1294_v6, %s1235_s13  ;;  %265 = vrot.lane.b32.xlu0 %v1297_v7, %s1235_s13  ;;  %v1444_v36 = vld [vmem:[%s1261_s12 + $0x128] sm:$0xff]  ;;  %v1447_v37 = vld [vmem:[%s1261_s12 + $0x120] sm:$0xff] }
  0x1f   : > { %v1454_v38 = vld [vmem:[%s1261_s12 + $0x138] sm:$0x7]  ;;  %v1457_v39 = vld [vmem:[%s1261_s12 + $0x130] sm:$0x7]  ;;  %v1464_v40 = vld [vmem:[%s1261_s12 + $0x148] sm:$0xff] }
  0x20   : > { %v1467_v41 = vld [vmem:[%s1261_s12 + $0x140] sm:$0xff]  ;;  %v1474_v42 = vld [vmem:[%s1261_s12 + $0x158] sm:$0xff]  ;;  %v1477_v43 = vld [vmem:[%s1261_s12 + $0x150] sm:$0xff] }
  0x21   : > { %v1484_v44 = vld [vmem:[%s1261_s12 + $0x168] sm:$0xff]  ;;  %v1487_v45 = vld [vmem:[%s1261_s12 + $0x160] sm:$0xff]  ;;  %v1494_v46 = vld [vmem:[%s1261_s12 + $0x178] sm:$0x7] }
  0x22   : > { %271 = vrot.lane.b32.xlu1 %v1304_v8, %s1235_s13  ;;  %269 = vrot.lane.b32.xlu0 %v1307_v9, %s1235_s13  ;;  %v1497_v47 = vld [vmem:[%s1261_s12 + $0x170] sm:$0x7]  ;;  %v1504_v48 = vld [vmem:[%s1261_s12 + $0x188] sm:$0xff] }
  0x23   : > { %v1507_v49 = vld [vmem:[%s1261_s12 + $0x180] sm:$0xff]  ;;  %v1514_v50 = vld [vmem:[%s1261_s12 + $0x198] sm:$0xff]  ;;  %v1517_v51 = vld [vmem:[%s1261_s12 + $0x190] sm:$0xff] }
  0x24   : > { %2001 = vst [vmem:[#allocation2_spill] sm:$0xff] %v1507_v49  ;;  %2002 = vst [vmem:[#allocation3_spill] sm:$0xff] %v1514_v50  ;;  %v1524_v52 = vld [vmem:[%s1261_s12 + $0x1a8] sm:$0xff]  ;;  %v1527_v53 = vld [vmem:[%s1261_s12 + $0x1a0] sm:$0xff] }
  0x25   : > { %2003 = vst [vmem:[#allocation4_spill] sm:$0xff] %v1517_v51  ;;  %2004 = vst [vmem:[#allocation5_spill] sm:$0xff] %v1524_v52  ;;  %v1534_v54 = vld [vmem:[%s1261_s12 + $0x1b8] sm:$0x7]  ;;  %v1537_v55 = vld [vmem:[%s1261_s12 + $0x1b0] sm:$0x7] }
  0x26   : > { %275 = vrot.lane.b32.xlu1 %v1314_v10, %s1235_s13  ;;  %273 = vrot.lane.b32.xlu0 %v1317_v11, %s1235_s13  ;;  %2005 = vst [vmem:[#allocation6_spill] sm:$0xff] %v1527_v53  ;;  %2006 = vst [vmem:[#allocation7_spill] sm:$0xff] %v1534_v54  ;;  %v1544_v56 = vld [vmem:[%s1261_s12 + $0x1c8] sm:$0xff]  ;;  %v1547_v57 = vld [vmem:[%s1261_s12 + $0x1c0] sm:$0xff] }
  0x27   : > { %2007 = vst [vmem:[#allocation8_spill] sm:$0xff] %v1537_v55  ;;  %2008 = vst [vmem:[#allocation9_spill] sm:$0xff] %v1544_v56  ;;  %v1554_v58 = vld [vmem:[%s1261_s12 + $0x1d8] sm:$0xff]  ;;  %v1557_v59 = vld [vmem:[%s1261_s12 + $0x1d0] sm:$0xff] }
  0x28   : > { %2009 = vst [vmem:[#allocation10_spill] sm:$0xff] %v1547_v57  ;;  %2010 = vst [vmem:[#allocation11_spill] sm:$0xff] %v1554_v58  ;;  %v1564_v62 = vld [vmem:[%s1261_s12 + $0x1e8] sm:$0xff]  ;;  %v1567_v63 = vld [vmem:[%s1261_s12 + $0x1e0] sm:$0xff] }
  0x29   : > { %2011 = vst [vmem:[#allocation12_spill] sm:$0xff] %v1557_v59  ;;  %2012 = vst [vmem:[#allocation13_spill] sm:$0xff] %v1564_v62 }
  0x2a   : > { %279 = vrot.lane.b32.xlu1 %v1324_v12, %s1235_s13  ;;  %277 = vrot.lane.b32.xlu0 %v1327_v13, %s1235_s13  ;;  %2013 = vst [vmem:[#allocation14_spill] sm:$0xff] %v1567_v63 }
  0x2e   : > { %283 = vrot.lane.b32.xlu1 %v1334_v14, %s1235_s13  ;;  %281 = vrot.lane.b32.xlu0 %v1337_v15, %s1235_s13 }
  0x32   : > { %287 = vrot.lane.b32.xlu1 %v1344_v16, %s1235_s13  ;;  %285 = vrot.lane.b32.xlu0 %v1347_v17, %s1235_s13 }
  0x36   : > { %291 = vrot.lane.b32.xlu1 %v1354_v18, %s1235_s13  ;;  %289 = vrot.lane.b32.xlu0 %v1357_v19, %s1235_s13 }
  0x3a   : > { %295 = vrot.lane.b32.xlu1 %v1364_v20, %s1235_s13  ;;  %293 = vrot.lane.b32.xlu0 %v1367_v21, %s1235_s13 }
  0x3e   : > { %299 = vrot.lane.b32.xlu1 %v1374_v22, %s1235_s13  ;;  %297 = vrot.lane.b32.xlu0 %v1377_v23, %s1235_s13 }
  0x42   : > { %303 = vrot.lane.b32.xlu1 %v1384_v24, %s1235_s13  ;;  %301 = vrot.lane.b32.xlu0 %v1387_v25, %s1235_s13 }
  0x46   : > { %307 = vrot.lane.b32.xlu1 %v1394_v26, %s1235_s13  ;;  %305 = vrot.lane.b32.xlu0 %v1397_v27, %s1235_s13 }
  0x4a   : > { %311 = vrot.lane.b32.xlu1 %v1404_v28, %s1235_s13  ;;  %309 = vrot.lane.b32.xlu0 %v1407_v29, %s1235_s13 }
  0x4e   : > { %315 = vrot.lane.b32.xlu1 %v1414_v30, %s1235_s13  ;;  %313 = vrot.lane.b32.xlu0 %v1417_v31, %s1235_s13 }
  0x52   : > { %319 = vrot.lane.b32.xlu1 %v1424_v32, %s1235_s13  ;;  %317 = vrot.lane.b32.xlu0 %v1427_v33, %s1235_s13 }
  0x56   : > { %323 = vrot.lane.b32.xlu1 %v1434_v34, %s1235_s13  ;;  %321 = vrot.lane.b32.xlu0 %v1437_v35, %s1235_s13 }
  0x5a   : > { %327 = vrot.lane.b32.xlu1 %v1444_v36, %s1235_s13  ;;  %325 = vrot.lane.b32.xlu0 %v1447_v37, %s1235_s13 }
  0x5e   : > { %331 = vrot.lane.b32.xlu1 %v1454_v38, %s1235_s13  ;;  %329 = vrot.lane.b32.xlu0 %v1457_v39, %s1235_s13 }
  0x62   : > { %335 = vrot.lane.b32.xlu1 %v1464_v40, %s1235_s13  ;;  %333 = vrot.lane.b32.xlu0 %v1467_v41, %s1235_s13 }
  0x66   : > { %339 = vrot.lane.b32.xlu1 %v1474_v42, %s1235_s13  ;;  %337 = vrot.lane.b32.xlu0 %v1477_v43, %s1235_s13 }
  0x6a   : > { %343 = vrot.lane.b32.xlu1 %v1484_v44, %s1235_s13  ;;  %341 = vrot.lane.b32.xlu0 %v1487_v45, %s1235_s13 }
  0x6e   : > { %347 = vrot.lane.b32.xlu1 %v1494_v46, %s1235_s13  ;;  %345 = vrot.lane.b32.xlu0 %v1497_v47, %s1235_s13 }
  0x72   : > { %351 = vrot.lane.b32.xlu1 %v1504_v48, %s1235_s13  ;;  %349 = vrot.lane.b32.xlu0 %v1507_v49, %s1235_s13 }
  0x76   : > { %355 = vrot.lane.b32.xlu1 %v1514_v50, %s1235_s13  ;;  %353 = vrot.lane.b32.xlu0 %v1517_v51, %s1235_s13 }
  0x7a   : > { %359 = vrot.lane.b32.xlu1 %v1524_v52, %s1235_s13  ;;  %357 = vrot.lane.b32.xlu0 %v1527_v53, %s1235_s13 }
  0x7e   : > { %363 = vrot.lane.b32.xlu1 %v1534_v54, %s1235_s13  ;;  %361 = vrot.lane.b32.xlu0 %v1537_v55, %s1235_s13  ;;  %v1577_v54 = vld [vmem:[%s1261_s12 + $0x1f0] sm:$0x7] }
  0x7f   : > { %2015 = vst [vmem:[#allocation16_spill] sm:$0xff] %v1577_v54 }
  0x82   : > { %367 = vrot.lane.b32.xlu1 %v1544_v56, %s1235_s13  ;;  %365 = vrot.lane.b32.xlu0 %v1547_v57, %s1235_s13  ;;  %v1574_v57 = vld [vmem:[%s1261_s12 + $0x1f8] sm:$0x7] }
  0x83   : > { %2014 = vst [vmem:[#allocation15_spill] sm:$0xff] %v1574_v57 }
  0x84   : > { %v258_v60 = vpop.permute.xlu1 %257  ;;  %v254_v61 = vpop.permute.xlu0 %253 }
  0x86   : > { %371 = vrot.lane.b32.xlu1 %v1554_v58, %s1235_s13  ;;  %369 = vrot.lane.b32.xlu0 %v1557_v59, %s1235_s13 }
  0x88   : > { %v260_v56 = vpop.permute.xlu1 %259  ;;  %v256_v55 = vpop.permute.xlu0 %255 }
  0x89   : > { %v382_v59 = vsel %vm381_vm0, %v254_v61, %v256_v55  ;;  %v510_v52 = vadd.f32 %v256_v55, %v1277_v3  ;;  %v383_v50 = vsel %vm381_vm0, %v258_v60, %v260_v56  ;;  %v511_v61 = vadd.f32 %v260_v56, %v1274_v2 }
  0x8a   : > { %375 = vrot.lane.b32.xlu1 %v1564_v62, %s1235_s13  ;;  %373 = vrot.lane.b32.xlu0 %v1567_v63, %s1235_s13  ;;  %v1586_v63 = vadd.f32 %v382_v59, %v1267_v1 }
  0x8c   : > { %v264_v58 = vpop.permute.xlu1 %263  ;;  %v262_v53 = vpop.permute.xlu0 %261 }
  0x8d   : > { %v384_v3 = vsel %vm381_vm0, %v262_v53, %v264_v58  ;;  %v512_v1 = vadd.f32 %v264_v58, %v1284_v4 }
  0x8e   : > { %379 = vrot.lane.b32.xlu1 %v1574_v57, %s1235_s13  ;;  %377 = vrot.lane.b32.xlu0 %v1577_v54, %s1235_s13  ;;  %v1594_v54 = vadd.f32 %v383_v50, %v1264_v0 }
  0x90   : > { %v268_v62 = vpop.permute.xlu1 %267  ;;  %v266_v51 = vpop.permute.xlu0 %265 }
  0x91   : > { %v385_v2 = vsel %vm381_vm0, %v266_v51, %v268_v62  ;;  %v513_v0 = vadd.f32 %v268_v62, %v1294_v6 }
  0x92   : > { %608 = vrot.lane.b32.xlu1 %v510_v52, %s1236_s14  ;;  %606 = vrot.lane.b32.xlu0 %v1586_v63, %s1236_s14  ;;  %v1602_v52 = vadd.f32 %v384_v3, %v1287_v5  ;;  %v1610_v50 = vadd.f32 %v385_v2, %v1297_v7 }
  0x94   : > { %v272_v57 = vpop.permute.xlu1 %271  ;;  %v270_v49 = vpop.permute.xlu0 %269 }
  0x95   : > { %v386_v4 = vsel %vm381_vm0, %v270_v49, %v272_v57  ;;  %v514_v5 = vadd.f32 %v272_v57, %v1304_v8 }
  0x96   : > { %612 = vrot.lane.b32.xlu1 %v511_v61, %s1236_s14  ;;  %610 = vrot.lane.b32.xlu0 %v1594_v54, %s1236_s14  ;;  %v1618_v51 = vadd.f32 %v386_v4, %v1307_v9 }
  0x98   : > { %v276_v55 = vpop.permute.xlu1 %275  ;;  %v274_v59 = vpop.permute.xlu0 %273 }
  0x99   : > { %v387_v6 = vsel %vm381_vm0, %v274_v59, %v276_v55  ;;  %v515_v7 = vadd.f32 %v276_v55, %v1314_v10 }
  0x9a   : > { %616 = vrot.lane.b32.xlu1 %v512_v1, %s1236_s14  ;;  %614 = vrot.lane.b32.xlu0 %v1602_v52, %s1236_s14  ;;  %v1626_v49 = vadd.f32 %v387_v6, %v1317_v11 }
  0x9c   : > { %v280_v53 = vpop.permute.xlu1 %279  ;;  %v278_v56 = vpop.permute.xlu0 %277 }
  0x9d   : > { %v388_v8 = vsel %vm381_vm0, %v278_v56, %v280_v53  ;;  %v516_v9 = vadd.f32 %v280_v53, %v1324_v12 }
  0x9e   : > { %620 = vrot.lane.b32.xlu1 %v513_v0, %s1236_s14  ;;  %618 = vrot.lane.b32.xlu0 %v1610_v50, %s1236_s14  ;;  %v1634_v57 = vadd.f32 %v388_v8, %v1327_v13 }
  0xa0   : > { %v284_v58 = vpop.permute.xlu1 %283  ;;  %v282_v60 = vpop.permute.xlu0 %281 }
  0xa1   : > { %v389_v10 = vsel %vm381_vm0, %v282_v60, %v284_v58  ;;  %v517_v11 = vadd.f32 %v284_v58, %v1334_v14 }
  0xa2   : > { %624 = vrot.lane.b32.xlu1 %v514_v5, %s1236_s14  ;;  %622 = vrot.lane.b32.xlu0 %v1618_v51, %s1236_s14  ;;  %v1642_v55 = vadd.f32 %v389_v10, %v1337_v15 }
  0xa4   : > { %v288_v62 = vpop.permute.xlu1 %287  ;;  %v286_v61 = vpop.permute.xlu0 %285 }
  0xa5   : > { %v390_v12 = vsel %vm381_vm0, %v286_v61, %v288_v62  ;;  %v518_v13 = vadd.f32 %v288_v62, %v1344_v16 }
  0xa6   : > { %628 = vrot.lane.b32.xlu1 %v515_v7, %s1236_s14  ;;  %626 = vrot.lane.b32.xlu0 %v1626_v49, %s1236_s14  ;;  %v1650_v0 = vadd.f32 %v390_v12, %v1347_v17 }
  0xa8   : > { %v292_v3 = vpop.permute.xlu1 %291  ;;  %v290_v1 = vpop.permute.xlu0 %289 }
  0xa9   : > { %v391_v14 = vsel %vm381_vm0, %v290_v1, %v292_v3  ;;  %v519_v15 = vadd.f32 %v292_v3, %v1354_v18 }
  0xaa   : > { %632 = vrot.lane.b32.xlu1 %v516_v9, %s1236_s14  ;;  %630 = vrot.lane.b32.xlu0 %v1634_v57, %s1236_s14  ;;  %v1658_v4 = vadd.f32 %v391_v14, %v1357_v19 }
  0xac   : > { %v296_v59 = vpop.permute.xlu1 %295  ;;  %v294_v2 = vpop.permute.xlu0 %293 }
  0xad   : > { %v392_v16 = vsel %vm381_vm0, %v294_v2, %v296_v59  ;;  %v520_v17 = vadd.f32 %v296_v59, %v1364_v20 }
  0xae   : > { %636 = vrot.lane.b32.xlu1 %v517_v11, %s1236_s14  ;;  %634 = vrot.lane.b32.xlu0 %v1642_v55, %s1236_s14  ;;  %v1666_v60 = vadd.f32 %v392_v16, %v1367_v21 }
  0xb0   : > { %v300_v53 = vpop.permute.xlu1 %299  ;;  %v298_v56 = vpop.permute.xlu0 %297 }
  0xb1   : > { %v393_v18 = vsel %vm381_vm0, %v298_v56, %v300_v53  ;;  %v521_v19 = vadd.f32 %v300_v53, %v1374_v22 }
  0xb2   : > { %640 = vrot.lane.b32.xlu1 %v518_v13, %s1236_s14  ;;  %638 = vrot.lane.b32.xlu0 %v1650_v0, %s1236_s14  ;;  %v1674_v62 = vadd.f32 %v393_v18, %v1377_v23 }
  0xb4   : > { %v304_v5 = vpop.permute.xlu1 %303  ;;  %v302_v58 = vpop.permute.xlu0 %301 }
  0xb5   : > { %v394_v20 = vsel %vm381_vm0, %v302_v58, %v304_v5  ;;  %v522_v21 = vadd.f32 %v304_v5, %v1384_v24 }
  0xb6   : > { %644 = vrot.lane.b32.xlu1 %v519_v15, %s1236_s14  ;;  %642 = vrot.lane.b32.xlu0 %v1658_v4, %s1236_s14  ;;  %v1682_v9 = vadd.f32 %v394_v20, %v1387_v25 }
  0xb8   : > { %v308_v6 = vpop.permute.xlu1 %307  ;;  %v306_v7 = vpop.permute.xlu0 %305 }
  0xb9   : > { %v395_v22 = vsel %vm381_vm0, %v306_v7, %v308_v6  ;;  %v523_v23 = vadd.f32 %v308_v6, %v1394_v26 }
  0xba   : > { %648 = vrot.lane.b32.xlu1 %v520_v17, %s1236_s14  ;;  %646 = vrot.lane.b32.xlu0 %v1666_v60, %s1236_s14  ;;  %v1690_v10 = vadd.f32 %v395_v22, %v1397_v27 }
  0xbc   : > { %v312_v61 = vpop.permute.xlu1 %311  ;;  %v310_v8 = vpop.permute.xlu0 %309 }
  0xbd   : > { %v396_v24 = vsel %vm381_vm0, %v310_v8, %v312_v61  ;;  %v524_v25 = vadd.f32 %v312_v61, %v1404_v28 }
  0xbe   : > { %652 = vrot.lane.b32.xlu1 %v521_v19, %s1236_s14  ;;  %650 = vrot.lane.b32.xlu0 %v1674_v62, %s1236_s14  ;;  %v1698_v2 = vadd.f32 %v396_v24, %v1407_v29 }
  0xc0   : > { %v316_v3 = vpop.permute.xlu1 %315  ;;  %v314_v1 = vpop.permute.xlu0 %313 }
  0xc1   : > { %v397_v26 = vsel %vm381_vm0, %v314_v1, %v316_v3  ;;  %v525_v27 = vadd.f32 %v316_v3, %v1414_v30 }
  0xc2   : > { %656 = vrot.lane.b32.xlu1 %v522_v21, %s1236_s14  ;;  %654 = vrot.lane.b32.xlu0 %v1682_v9, %s1236_s14  ;;  %v1706_v53 = vadd.f32 %v397_v26, %v1417_v31 }
  0xc4   : > { %v320_v11 = vpop.permute.xlu1 %319  ;;  %v318_v59 = vpop.permute.xlu0 %317 }
  0xc5   : > { %v398_v28 = vsel %vm381_vm0, %v318_v59, %v320_v11  ;;  %v526_v29 = vadd.f32 %v320_v11, %v1424_v32 }
  0xc6   : > { %660 = vrot.lane.b32.xlu1 %v523_v23, %s1236_s14  ;;  %658 = vrot.lane.b32.xlu0 %v1690_v10, %s1236_s14  ;;  %v1714_v15 = vadd.f32 %v398_v28, %v1427_v33 }
  0xc8   : > { %v324_v12 = vpop.permute.xlu1 %323  ;;  %v322_v13 = vpop.permute.xlu0 %321 }
  0xc9   : > { %v399_v30 = vsel %vm381_vm0, %v322_v13, %v324_v12  ;;  %v527_v31 = vadd.f32 %v324_v12, %v1434_v34 }
  0xca   : > { %664 = vrot.lane.b32.xlu1 %v524_v25, %s1236_s14  ;;  %662 = vrot.lane.b32.xlu0 %v1698_v2, %s1236_s14  ;;  %v1722_v16 = vadd.f32 %v399_v30, %v1437_v35 }
  0xcc   : > { %v328_v56 = vpop.permute.xlu1 %327  ;;  %v326_v14 = vpop.permute.xlu0 %325 }
  0xcd   : > { %v400_v32 = vsel %vm381_vm0, %v326_v14, %v328_v56  ;;  %v528_v33 = vadd.f32 %v328_v56, %v1444_v36 }
  0xce   : > { %668 = vrot.lane.b32.xlu1 %v525_v27, %s1236_s14  ;;  %666 = vrot.lane.b32.xlu0 %v1706_v53, %s1236_s14  ;;  %v1730_v7 = vadd.f32 %v400_v32, %v1447_v37  ;;  %v2016_v27 = vld [vmem:[#allocation2_spill] sm:$0xff] }
  0xcf   : > { %v2020_v32 = vld [vmem:[#allocation6_spill] sm:$0xff] }
  0xd0   : > { %v332_v5 = vpop.permute.xlu1 %331  ;;  %v330_v58 = vpop.permute.xlu0 %329 }
  0xd1   : > { %v401_v34 = vsel %vm381_vm0, %v330_v58, %v332_v5  ;;  %v529_v35 = vadd.f32 %v332_v5, %v1454_v38  ;;  %v2018_v5 = vld [vmem:[#allocation4_spill] sm:$0xff] }
  0xd2   : > { %672 = vrot.lane.b32.xlu1 %v526_v29, %s1236_s14  ;;  %670 = vrot.lane.b32.xlu0 %v1714_v15, %s1236_s14  ;;  %v1738_v61 = vadd.f32 %v401_v34, %v1457_v39 }
  0xd4   : > { %v336_v17 = vpop.permute.xlu1 %335  ;;  %v334_v6 = vpop.permute.xlu0 %333 }
  0xd5   : > { %v402_v36 = vsel %vm381_vm0, %v334_v6, %v336_v17  ;;  %v530_v37 = vadd.f32 %v336_v17, %v1464_v40  ;;  %v2019_v17 = vld [vmem:[#allocation5_spill] sm:$0xff] }
  0xd6   : > { %676 = vrot.lane.b32.xlu1 %v527_v31, %s1236_s14  ;;  %674 = vrot.lane.b32.xlu0 %v1722_v16, %s1236_s14  ;;  %v1746_v21 = vadd.f32 %v402_v36, %v1467_v41 }
  0xd8   : > { %v340_v18 = vpop.permute.xlu1 %339  ;;  %v338_v19 = vpop.permute.xlu0 %337 }
  0xd9   : > { %v403_v38 = vsel %vm381_vm0, %v338_v19, %v340_v18  ;;  %v531_v39 = vadd.f32 %v340_v18, %v1474_v42 }
  0xda   : > { %680 = vrot.lane.b32.xlu1 %v528_v33, %s1236_s14  ;;  %678 = vrot.lane.b32.xlu0 %v1730_v7, %s1236_s14  ;;  %v1754_v22 = vadd.f32 %v403_v38, %v1477_v43  ;;  %v2023_v38 = vld [vmem:[#allocation9_spill] sm:$0xff] }
  0xdc   : > { %v344_v8 = vpop.permute.xlu1 %343  ;;  %v342_v20 = vpop.permute.xlu0 %341 }
  0xdd   : > { %v404_v40 = vsel %vm381_vm0, %v342_v20, %v344_v8  ;;  %v532_v41 = vadd.f32 %v344_v8, %v1484_v44  ;;  %v2022_v20 = vld [vmem:[#allocation8_spill] sm:$0xff] }
  0xde   : > { %684 = vrot.lane.b32.xlu1 %v529_v35, %s1236_s14  ;;  %682 = vrot.lane.b32.xlu0 %v1738_v61, %s1236_s14  ;;  %v1762_v59 = vadd.f32 %v404_v40, %v1487_v45  ;;  %v2021_v35 = vld [vmem:[#allocation7_spill] sm:$0xff] }
  0xe0   : > { %v348_v3 = vpop.permute.xlu1 %347  ;;  %v346_v1 = vpop.permute.xlu0 %345 }
  0xe1   : > { %v405_v42 = vsel %vm381_vm0, %v346_v1, %v348_v3  ;;  %v533_v43 = vadd.f32 %v348_v3, %v1494_v46 }
  0xe2   : > { %688 = vrot.lane.b32.xlu1 %v530_v37, %s1236_s14  ;;  %686 = vrot.lane.b32.xlu0 %v1746_v21, %s1236_s14  ;;  %v1770_v12 = vadd.f32 %v405_v42, %v1497_v47  ;;  %v2017_v47 = vld [vmem:[#allocation3_spill] sm:$0xff] }
  0xe4   : > { %v352_v23 = vpop.permute.xlu1 %351  ;;  %v350_v11 = vpop.permute.xlu0 %349 }
  0xe5   : > { %v406_v44 = vsel %vm381_vm0, %v350_v11, %v352_v23  ;;  %v534_v45 = vadd.f32 %v352_v23, %v1504_v48  ;;  %v2024_v23 = vld [vmem:[#allocation10_spill] sm:$0xff] }
  0xe6   : > { %692 = vrot.lane.b32.xlu1 %v531_v39, %s1236_s14  ;;  %690 = vrot.lane.b32.xlu0 %v1754_v22, %s1236_s14  ;;  %v1778_v56 = vadd.f32 %v406_v44, %v2016_v27 }
  0xe8   : > { %v356_v24 = vpop.permute.xlu1 %355  ;;  %v354_v25 = vpop.permute.xlu0 %353 }
  0xe9   : > { %v407_v46 = vsel %vm381_vm0, %v354_v25, %v356_v24  ;;  %v535_v29 = vadd.f32 %v356_v24, %v2017_v47  ;;  %v2025_v25 = vld [vmem:[#allocation11_spill] sm:$0xff] }
  0xea   : > { %696 = vrot.lane.b32.xlu1 %v532_v41, %s1236_s14  ;;  %694 = vrot.lane.b32.xlu0 %v1762_v59, %s1236_s14  ;;  %v1786_v58 = vadd.f32 %v407_v46, %v2018_v5  ;;  %v2028_v46 = vld [vmem:[#allocation14_spill] sm:$0xff] }
  0xec   : > { %v360_v13 = vpop.permute.xlu1 %359  ;;  %v358_v26 = vpop.permute.xlu0 %357 }
  0xed   : > { %v408_v48 = vsel %vm381_vm0, %v358_v26, %v360_v13  ;;  %v536_v6 = vadd.f32 %v360_v13, %v2019_v17 }
  0xee   : > { %700 = vrot.lane.b32.xlu1 %v533_v43, %s1236_s14  ;;  %698 = vrot.lane.b32.xlu0 %v1770_v12, %s1236_s14  ;;  %v1794_v33 = vadd.f32 %v408_v48, %v2020_v32  ;;  %v2026_v43 = vld [vmem:[#allocation12_spill] sm:$0xff] }
  0xf0   : > { %v364_v14 = vpop.permute.xlu1 %363  ;;  %v362_v28 = vpop.permute.xlu0 %361 }
  0xf1   : > { %v409_v34 = vsel %vm381_vm0, %v362_v28, %v364_v14  ;;  %v537_v8 = vadd.f32 %v364_v14, %v2021_v35  ;;  %v2027_v14 = vld [vmem:[#allocation13_spill] sm:$0xff] }
  0xf2   : > { %704 = vrot.lane.b32.xlu1 %v534_v45, %s1236_s14  ;;  %702 = vrot.lane.b32.xlu0 %v1778_v56, %s1236_s14  ;;  %v1802_v36 = vadd.f32 %v409_v34, %v2022_v20 }
  0xf4   : > { %v368_v30 = vpop.permute.xlu1 %367  ;;  %v366_v31 = vpop.permute.xlu0 %365 }
  0xf5   : > { %v410_v1 = vsel %vm381_vm0, %v366_v31, %v368_v30  ;;  %v538_v39 = vadd.f32 %v368_v30, %v2023_v38 }
  0xf6   : > { %708 = vrot.lane.b32.xlu1 %v535_v29, %s1236_s14  ;;  %706 = vrot.lane.b32.xlu0 %v1786_v58, %s1236_s14  ;;  %v1810_v11 = vadd.f32 %v410_v1, %v2024_v23 }
  0xf8   : > { %v372_v18 = vpop.permute.xlu1 %371  ;;  %v370_v19 = vpop.permute.xlu0 %369 }
  0xf9   : > { %v411_v24 = vsel %vm381_vm0, %v370_v19, %v372_v18  ;;  %v539_v42 = vadd.f32 %v372_v18, %v2025_v25  ;;  %v2030_v18 = vld [vmem:[#allocation16_spill] sm:$0xff] }
  0xfa   : > { %712 = vrot.lane.b32.xlu1 %v536_v6, %s1236_s14  ;;  %710 = vrot.lane.b32.xlu0 %v1794_v33, %s1236_s14  ;;  %v1818_v13 = vadd.f32 %v411_v24, %v2026_v43  ;;  %v2029_v6 = vld [vmem:[#allocation15_spill] sm:$0xff] }
  0xfc   : > { %v376_v37 = vpop.permute.xlu1 %375  ;;  %v374_v3 = vpop.permute.xlu0 %373 }
  0xfd   : > { %v412_v45 = vsel %vm381_vm0, %v374_v3, %v376_v37  ;;  %v540_v28 = vadd.f32 %v376_v37, %v2027_v14 }
  0xfe   : > { %716 = vrot.lane.b32.xlu1 %v537_v8, %s1236_s14  ;;  %714 = vrot.lane.b32.xlu0 %v1802_v36, %s1236_s14  ;;  %v1827_v47 = vadd.f32 %v412_v45, %v2028_v46 }
 0x100   : > { %v380_v40 = vpop.permute.xlu1 %379  ;;  %v378_v41 = vpop.permute.xlu0 %377 }
 0x101   : > { %v413_v31 = vsel %vm381_vm0, %v378_v41, %v380_v40  ;;  %v541_v32 = vadd.f32 %v380_v40, %v2029_v6 }
 0x102   : > { %720 = vrot.lane.b32.xlu1 %v538_v39, %s1236_s14  ;;  %718 = vrot.lane.b32.xlu0 %v1810_v11, %s1236_s14  ;;  %v1838_v19 = vadd.f32 %v413_v31, %v2030_v18 }
 0x104   : > { %v609_v26 = vpop.permute.xlu1 %608  ;;  %v607_v44 = vpop.permute.xlu0 %606 }
 0x105   : > { %v735_v27 = vsel %vm734_vm1, %v607_v44, %v609_v26 }
 0x106   : > { %724 = vrot.lane.b32.xlu1 %v539_v42, %s1236_s14  ;;  %722 = vrot.lane.b32.xlu0 %v1818_v13, %s1236_s14  ;;  %v799_v29 = vadd.f32 %v735_v27, %v1586_v63 }
 0x108   : > { %v613_v5 = vpop.permute.xlu1 %612  ;;  %v611_v30 = vpop.permute.xlu0 %610  ;;  %v864_v63 = vrot.slane %v799_v29, 1 }
 0x109   : > { %v736_v48 = vsel %vm734_vm1, %v611_v30, %v613_v5 }
 0x10a   : > { %v800_v17 = vadd.f32 %v736_v48, %v1594_v54  ;;  %728 = vrot.lane.b32.xlu1 %v540_v28, %s1236_s14  ;;  %726 = vrot.lane.b32.xlu0 %v1827_v47, %s1236_s14 }
 0x10c   : > { %v865_v34 = vrot.slane %v800_v17, 1  ;;  %v617_v35 = vpop.permute.xlu1 %616  ;;  %v615_v8 = vpop.permute.xlu0 %614 }
 0x10d   : > { %v737_v20 = vsel %vm734_vm1, %v615_v8, %v617_v35 }
 0x10e   : > { %v866_v54 = vsel %vm863_vm2, %v864_v63, %v865_v34  ;;  %v801_v37 = vadd.f32 %v737_v20, %v1602_v52  ;;  %732 = vrot.lane.b32.xlu1 %v541_v32, %s1236_s14  ;;  %730 = vrot.lane.b32.xlu0 %v1838_v19, %s1236_s14 }
 0x10f   : > { %v944_v39 = vadd.f32 %v866_v54, %v799_v29 }
 0x110   : > { %v867_v3 = vrot.slane %v801_v37, 1  ;;  %v621_v1 = vpop.permute.xlu1 %620  ;;  %v619_v38 = vpop.permute.xlu0 %618 }
 0x111   : > { %v738_v23 = vsel %vm734_vm1, %v619_v38, %v621_v1  ;;  %v1017_v43 = vrot.slane %v944_v39, 2 }
 0x112   : > { %v868_v40 = vsel %vm863_vm2, %v865_v34, %v867_v3  ;;  %v802_v41 = vadd.f32 %v738_v23, %v1610_v50 }
 0x113   : > { %v945_v24 = vadd.f32 %v868_v40, %v800_v17 }
 0x114   : > { %v869_v25 = vrot.slane %v802_v41, 1  ;;  %v625_v52 = vpop.permute.xlu1 %624  ;;  %v623_v42 = vpop.permute.xlu0 %622 }
 0x115   : > { %v1018_v26 = vrot.slane %v945_v24, 2  ;;  %v739_v44 = vsel %vm734_vm1, %v623_v42, %v625_v52 }
 0x116   : > { %v870_v45 = vsel %vm863_vm2, %v867_v3, %v869_v25  ;;  %v976_v27 = vadd.f32 %v869_v25, %v802_v41  ;;  %v803_v29 = vadd.f32 %v739_v44, %v1618_v51 }
 0x117   : > { %v1019_v50 = vsel %vm1016_vm3, %v1017_v43, %v1018_v26  ;;  %v946_v14 = vadd.f32 %v870_v45, %v801_v37 }
 0x118   : > { %v1097_v28 = vadd.f32 %v1019_v50, %v944_v39  ;;  %v1022_v46 = vrot.slane %v976_v27, 2  ;;  %v629_v5 = vpop.permute.xlu1 %628  ;;  %v627_v30 = vpop.permute.xlu0 %626  ;;  %v871_v34 = vrot.slane %v803_v29, 1 }
 0x119   : > { %v1020_v31 = vrot.slane %v946_v14, 2  ;;  %v740_v48 = vsel %vm734_vm1, %v627_v30, %v629_v5 }
 0x11a   : > { %1121 = vst [vmem:[%s1855_s18] sm:$0xff] %v1097_v28  ;;  %v804_v17 = vadd.f32 %v740_v48, %v1626_v49 }
 0x11b   : > { %v1021_v6 = vsel %vm1016_vm3, %v1018_v26, %v1020_v31  ;;  %v1023_v32 = vsel %vm1016_vm3, %v1020_v31, %v1022_v46 }
 0x11c   : > { %v1098_v18 = vadd.f32 %v1021_v6, %v945_v24  ;;  %v1099_v63 = vadd.f32 %v1023_v32, %v946_v14  ;;  %v872_v35 = vrot.slane %v804_v17, 1  ;;  %v633_v8 = vpop.permute.xlu1 %632  ;;  %v631_v51 = vpop.permute.xlu0 %630 }
 0x11d   : > { %v741_v20 = vsel %vm734_vm1, %v631_v51, %v633_v8 }
 0x11e   : > { %1122 = vst [vmem:[%s1855_s18 + $0x8] sm:$0xff] %v1098_v18  ;;  %1123 = vst [vmem:[%s1855_s18 + $0x10] sm:$0xff] %v1099_v63  ;;  %v873_v54 = vsel %vm863_vm2, %v871_v34, %v872_v35  ;;  %v805_v37 = vadd.f32 %v741_v20, %v1634_v57 }
 0x11f   : > { %v947_v38 = vadd.f32 %v873_v54, %v803_v29 }
 0x120   : > { %v874_v3 = vrot.slane %v805_v37, 1  ;;  %v637_v49 = vpop.permute.xlu1 %636  ;;  %v635_v1 = vpop.permute.xlu0 %634 }
 0x121   : > { %v742_v39 = vsel %vm734_vm1, %v635_v1, %v637_v49  ;;  %v1024_v42 = vrot.slane %v947_v38, 2 }
 0x122   : > { %v875_v23 = vsel %vm863_vm2, %v872_v35, %v874_v3  ;;  %v806_v40 = vadd.f32 %v742_v39, %v1642_v55 }
 0x123   : > { %v948_v41 = vadd.f32 %v875_v23, %v804_v17 }
 0x124   : > { %v876_v24 = vrot.slane %v806_v40, 1  ;;  %v641_v25 = vpop.permute.xlu1 %640  ;;  %v639_v52 = vpop.permute.xlu0 %638 }
 0x125   : > { %v1025_v43 = vrot.slane %v948_v41, 2  ;;  %v743_v26 = vsel %vm734_vm1, %v639_v52, %v641_v25 }
 0x126   : > { %v877_v57 = vsel %vm863_vm2, %v874_v3, %v876_v24  ;;  %v977_v44 = vadd.f32 %v876_v24, %v806_v40  ;;  %v807_v28 = vadd.f32 %v743_v26, %v1650_v0 }
 0x127   : > { %v1026_v45 = vsel %vm1016_vm3, %v1024_v42, %v1025_v43  ;;  %v949_v27 = vadd.f32 %v877_v57, %v805_v37 }
 0x128   : > { %v1100_v50 = vadd.f32 %v1026_v45, %v947_v38  ;;  %v1029_v14 = vrot.slane %v977_v44, 2  ;;  %v645_v55 = vpop.permute.xlu1 %644  ;;  %v643_v46 = vpop.permute.xlu0 %642  ;;  %v878_v32 = vrot.slane %v807_v28, 1 }
 0x129   : > { %v1027_v29 = vrot.slane %v949_v27, 2  ;;  %v744_v5 = vsel %vm734_vm1, %v643_v46, %v645_v55 }
 0x12a   : > { %1124 = vst [vmem:[%s1855_s18 + $0x18] sm:$0xff] %v1100_v50  ;;  %v808_v30 = vadd.f32 %v744_v5, %v1658_v4 }
 0x12b   : > { %v1028_v31 = vsel %vm1016_vm3, %v1025_v43, %v1027_v29  ;;  %v1030_v48 = vsel %vm1016_vm3, %v1027_v29, %v1029_v14 }
 0x12c   : > { %v1101_v17 = vadd.f32 %v1028_v31, %v948_v41  ;;  %v1102_v6 = vadd.f32 %v1030_v48, %v949_v27  ;;  %v879_v18 = vrot.slane %v808_v30, 1  ;;  %v649_v63 = vpop.permute.xlu1 %648  ;;  %v647_v0 = vpop.permute.xlu0 %646 }
 0x12d   : > { %v745_v34 = vsel %vm734_vm1, %v647_v0, %v649_v63 }
 0x12e   : > { %1125 = vst [vmem:[%s1855_s18 + $0x20] sm:$0xff] %v1101_v17  ;;  %1126 = vst [vmem:[%s1855_s18 + $0x28] sm:$0xff] %v1102_v6  ;;  %v880_v35 = vsel %vm863_vm2, %v878_v32, %v879_v18  ;;  %v809_v8 = vadd.f32 %v745_v34, %v1666_v60 }
 0x12f   : > { %v950_v54 = vadd.f32 %v880_v35, %v807_v28 }
 0x130   : > { %v881_v51 = vrot.slane %v809_v8, 1  ;;  %v653_v4 = vpop.permute.xlu1 %652  ;;  %v651_v20 = vpop.permute.xlu0 %650 }
 0x131   : > { %v746_v37 = vsel %vm734_vm1, %v651_v20, %v653_v4  ;;  %v1031_v40 = vrot.slane %v950_v54, 2 }
 0x132   : > { %v882_v3 = vsel %vm863_vm2, %v879_v18, %v881_v51  ;;  %v810_v49 = vadd.f32 %v746_v37, %v1674_v62 }
 0x133   : > { %v951_v1 = vadd.f32 %v882_v3, %v808_v30 }
 0x134   : > { %v883_v38 = vrot.slane %v810_v49, 1  ;;  %v657_v39 = vpop.permute.xlu1 %656  ;;  %v655_v23 = vpop.permute.xlu0 %654 }
 0x135   : > { %v1032_v41 = vrot.slane %v951_v1, 2  ;;  %v747_v24 = vsel %vm734_vm1, %v655_v23, %v657_v39 }
 0x136   : > { %v884_v60 = vsel %vm863_vm2, %v881_v51, %v883_v38  ;;  %v978_v25 = vadd.f32 %v883_v38, %v810_v49  ;;  %v811_v57 = vadd.f32 %v747_v24, %v1682_v9 }
 0x137   : > { %v1033_v52 = vsel %vm1016_vm3, %v1031_v40, %v1032_v41  ;;  %v952_v42 = vadd.f32 %v884_v60, %v809_v8 }
 0x138   : > { %v1103_v43 = vadd.f32 %v1033_v52, %v950_v54  ;;  %v1036_v26 = vrot.slane %v978_v25, 2  ;;  %v661_v62 = vpop.permute.xlu1 %660  ;;  %v659_v44 = vpop.permute.xlu0 %658  ;;  %v885_v29 = vrot.slane %v811_v57, 1 }
 0x139   : > { %v1034_v45 = vrot.slane %v952_v42, 2  ;;  %v748_v27 = vsel %vm734_vm1, %v659_v44, %v661_v62 }
 0x13a   : > { %1127 = vst [vmem:[%s1855_s18 + $0x30] sm:$0xff] %v1103_v43  ;;  %v812_v50 = vadd.f32 %v748_v27, %v1690_v10 }
 0x13b   : > { %v1035_v14 = vsel %vm1016_vm3, %v1032_v41, %v1034_v45  ;;  %v1037_v28 = vsel %vm1016_vm3, %v1034_v45, %v1036_v26 }
 0x13c   : > { %v1104_v55 = vadd.f32 %v1035_v14, %v951_v1  ;;  %v1105_v46 = vadd.f32 %v1037_v28, %v952_v42  ;;  %v886_v5 = vrot.slane %v812_v50, 1  ;;  %v665_v30 = vpop.permute.xlu1 %664  ;;  %v663_v9 = vpop.permute.xlu0 %662 }
 0x13d   : > { %v749_v31 = vsel %vm734_vm1, %v663_v9, %v665_v30 }
 0x13e   : > { %1128 = vst [vmem:[%s1855_s18 + $0x38] sm:$0xff] %v1104_v55  ;;  %1129 = vst [vmem:[%s1855_s18 + $0x40] sm:$0xff] %v1105_v46  ;;  %v887_v48 = vsel %vm863_vm2, %v885_v29, %v886_v5  ;;  %v813_v17 = vadd.f32 %v749_v31, %v1698_v2 }
 0x13f   : > { %v953_v18 = vadd.f32 %v887_v48, %v811_v57 }
 0x140   : > { %v888_v6 = vrot.slane %v813_v17, 1  ;;  %v669_v10 = vpop.permute.xlu1 %668  ;;  %v667_v32 = vpop.permute.xlu0 %666 }
 0x141   : > { %v750_v63 = vsel %vm734_vm1, %v667_v32, %v669_v10  ;;  %v1038_v20 = vrot.slane %v953_v18, 2 }
 0x142   : > { %v889_v0 = vsel %vm863_vm2, %v886_v5, %v888_v6  ;;  %v814_v34 = vadd.f32 %v750_v63, %v1706_v53 }
 0x143   : > { %v954_v35 = vadd.f32 %v889_v0, %v812_v50 }
 0x144   : > { %v890_v8 = vrot.slane %v814_v34, 1  ;;  %v673_v51 = vpop.permute.xlu1 %672  ;;  %v671_v4 = vpop.permute.xlu0 %670 }
 0x145   : > { %v1039_v54 = vrot.slane %v954_v35, 2  ;;  %v751_v37 = vsel %vm734_vm1, %v671_v4, %v673_v51 }
 0x146   : > { %v891_v2 = vsel %vm863_vm2, %v888_v6, %v890_v8  ;;  %v979_v3 = vadd.f32 %v890_v8, %v814_v34  ;;  %v815_v23 = vadd.f32 %v751_v37, %v1714_v15 }
 0x147   : > { %v1040_v49 = vsel %vm1016_vm3, %v1038_v20, %v1039_v54  ;;  %v955_v1 = vadd.f32 %v891_v2, %v813_v17 }
 0x148   : > { %v1106_v38 = vadd.f32 %v1040_v49, %v953_v18  ;;  %v1043_v39 = vrot.slane %v979_v3, 2  ;;  %v677_v53 = vpop.permute.xlu1 %676  ;;  %v675_v40 = vpop.permute.xlu0 %674  ;;  %v892_v26 = vrot.slane %v815_v23, 1 }
 0x149   : > { %v1041_v41 = vrot.slane %v955_v1, 2  ;;  %v752_v24 = vsel %vm734_vm1, %v675_v40, %v677_v53 }
 0x14a   : > { %1130 = vst [vmem:[%s1855_s18 + $0x48] sm:$0xff] %v1106_v38  ;;  %v816_v60 = vadd.f32 %v752_v24, %v1722_v16 }
 0x14b   : > { %v1042_v25 = vsel %vm1016_vm3, %v1039_v54, %v1041_v41  ;;  %v1044_v52 = vsel %vm1016_vm3, %v1041_v41, %v1043_v39 }
 0x14c   : > { %v1107_v42 = vadd.f32 %v1042_v25, %v954_v35  ;;  %v1108_v43 = vadd.f32 %v1044_v52, %v955_v1  ;;  %v893_v57 = vrot.slane %v816_v60, 1  ;;  %v681_v62 = vpop.permute.xlu1 %680  ;;  %v679_v15 = vpop.permute.xlu0 %678 }
 0x14d   : > { %v753_v44 = vsel %vm734_vm1, %v679_v15, %v681_v62 }
 0x14e   : > { %1131 = vst [vmem:[%s1855_s18 + $0x50] sm:$0xff] %v1107_v42  ;;  %1132 = vst [vmem:[%s1855_s18 + $0x58] sm:$0xff] %v1108_v43  ;;  %v894_v45 = vsel %vm863_vm2, %v892_v26, %v893_v57  ;;  %v817_v27 = vadd.f32 %v753_v44, %v1730_v7 }
 0x14f   : > { %v956_v28 = vadd.f32 %v894_v45, %v815_v23 }
 0x150   : > { %v895_v50 = vrot.slane %v817_v27, 1  ;;  %v685_v16 = vpop.permute.xlu1 %684  ;;  %v683_v14 = vpop.permute.xlu0 %682 }
 0x151   : > { %v754_v55 = vsel %vm734_vm1, %v683_v14, %v685_v16  ;;  %v1045_v48 = vrot.slane %v956_v28, 2 }
 0x152   : > { %v896_v46 = vsel %vm863_vm2, %v893_v57, %v895_v50  ;;  %v818_v29 = vadd.f32 %v754_v55, %v1738_v61 }
 0x153   : > { %v957_v5 = vadd.f32 %v896_v46, %v816_v60 }
 0x154   : > { %v897_v30 = vrot.slane %v818_v29, 1  ;;  %v689_v9 = vpop.permute.xlu1 %688  ;;  %v687_v31 = vpop.permute.xlu0 %686 }
 0x155   : > { %v1046_v17 = vrot.slane %v957_v5, 2  ;;  %v755_v6 = vsel %vm734_vm1, %v687_v31, %v689_v9 }
 0x156   : > { %v898_v7 = vsel %vm863_vm2, %v895_v50, %v897_v30  ;;  %v980_v10 = vadd.f32 %v897_v30, %v818_v29  ;;  %v819_v34 = vadd.f32 %v755_v6, %v1746_v21 }
 0x157   : > { %v1047_v32 = vsel %vm1016_vm3, %v1045_v48, %v1046_v17  ;;  %v958_v18 = vadd.f32 %v898_v7, %v817_v27 }
 0x158   : > { %v1109_v63 = vadd.f32 %v1047_v32, %v956_v28  ;;  %v1050_v0 = vrot.slane %v980_v10, 2  ;;  %v693_v61 = vpop.permute.xlu1 %692  ;;  %v691_v35 = vpop.permute.xlu0 %690  ;;  %v899_v3 = vrot.slane %v819_v34, 1 }
 0x159   : > { %v1048_v8 = vrot.slane %v958_v18, 2  ;;  %v756_v51 = vsel %vm734_vm1, %v691_v35, %v693_v61 }
 0x15a   : > { %1133 = vst [vmem:[%s1855_s18 + $0x60] sm:$0xff] %v1109_v63  ;;  %v820_v4 = vadd.f32 %v756_v51, %v1754_v22 }
 0x15b   : > { %v1049_v20 = vsel %vm1016_vm3, %v1046_v17, %v1048_v8  ;;  %v1051_v54 = vsel %vm1016_vm3, %v1048_v8, %v1050_v0 }
 0x15c   : > { %v1110_v37 = vadd.f32 %v1049_v20, %v957_v5  ;;  %v1111_v2 = vadd.f32 %v1051_v54, %v958_v18  ;;  %v900_v49 = vrot.slane %v820_v4, 1  ;;  %v697_v1 = vpop.permute.xlu1 %696  ;;  %v695_v21 = vpop.permute.xlu0 %694 }
 0x15d   : > { %v757_v38 = vsel %vm734_vm1, %v695_v21, %v697_v1 }
 0x15e   : > { %1134 = vst [vmem:[%s1855_s18 + $0x68] sm:$0xff] %v1110_v37  ;;  %1135 = vst [vmem:[%s1855_s18 + $0x70] sm:$0xff] %v1111_v2  ;;  %v901_v39 = vsel %vm863_vm2, %v899_v3, %v900_v49  ;;  %v821_v23 = vadd.f32 %v757_v38, %v1762_v59 }
 0x15f   : > { %v959_v41 = vadd.f32 %v901_v39, %v819_v34 }
 0x160   : > { %v902_v53 = vrot.slane %v821_v23, 1  ;;  %v701_v22 = vpop.permute.xlu1 %700  ;;  %v699_v40 = vpop.permute.xlu0 %698 }
 0x161   : > { %v758_v24 = vsel %vm734_vm1, %v699_v40, %v701_v22  ;;  %v1052_v57 = vrot.slane %v959_v41, 2 }
 0x162   : > { %v903_v60 = vsel %vm863_vm2, %v900_v49, %v902_v53  ;;  %v822_v25 = vadd.f32 %v758_v24, %v1770_v12 }
 0x163   : > { %v960_v52 = vadd.f32 %v903_v60, %v820_v4 }
 0x164   : > { %v904_v42 = vrot.slane %v822_v25, 1  ;;  %v705_v43 = vpop.permute.xlu1 %704  ;;  %v703_v26 = vpop.permute.xlu0 %702 }
 0x165   : > { %v1053_v62 = vrot.slane %v960_v52, 2  ;;  %v759_v15 = vsel %vm734_vm1, %v703_v26, %v705_v43 }
 0x166   : > { %v905_v59 = vsel %vm863_vm2, %v902_v53, %v904_v42  ;;  %v981_v44 = vadd.f32 %v904_v42, %v822_v25  ;;  %v823_v14 = vadd.f32 %v759_v15, %v1778_v56 }
 0x167   : > { %v1054_v45 = vsel %vm1016_vm3, %v1052_v57, %v1053_v62  ;;  %v961_v27 = vadd.f32 %v905_v59, %v821_v23 }
 0x168   : > { %v1112_v50 = vadd.f32 %v1054_v45, %v959_v41  ;;  %v1057_v16 = vrot.slane %v981_v44, 2  ;;  %v709_v12 = vpop.permute.xlu1 %708  ;;  %v707_v28 = vpop.permute.xlu0 %706  ;;  %v906_v48 = vrot.slane %v823_v14, 1 }
 0x169   : > { %v1055_v55 = vrot.slane %v961_v27, 2  ;;  %v760_v46 = vsel %vm734_vm1, %v707_v28, %v709_v12 }
 0x16a   : > { %1136 = vst [vmem:[%s1855_s18 + $0x78] sm:$0xff] %v1112_v50  ;;  %v824_v29 = vadd.f32 %v760_v46, %v1786_v58 }
 0x16b   : > { %v1056_v5 = vsel %vm1016_vm3, %v1053_v62, %v1055_v55  ;;  %v1058_v30 = vsel %vm1016_vm3, %v1055_v55, %v1057_v16 }
 0x16c   : > { %v1113_v9 = vadd.f32 %v1056_v5, %v960_v52  ;;  %v1114_v31 = vadd.f32 %v1058_v30, %v961_v27  ;;  %v907_v17 = vrot.slane %v824_v29, 1  ;;  %v713_v6 = vpop.permute.xlu1 %712  ;;  %v711_v56 = vpop.permute.xlu0 %710 }
 0x16d   : > { %v761_v7 = vsel %vm734_vm1, %v711_v56, %v713_v6 }
 0x16e   : > { %1137 = vst [vmem:[%s1855_s18 + $0x80] sm:$0xff] %v1113_v9  ;;  %1138 = vst [vmem:[%s1855_s18 + $0x88] sm:$0xff] %v1114_v31  ;;  %v908_v10 = vsel %vm863_vm2, %v906_v48, %v907_v17  ;;  %v825_v32 = vadd.f32 %v761_v7, %v1794_v33 }
 0x16f   : > { %v962_v0 = vadd.f32 %v908_v10, %v823_v14 }
 0x170   : > { %v909_v18 = vrot.slane %v825_v32, 1  ;;  %v717_v58 = vpop.permute.xlu1 %716  ;;  %v715_v63 = vpop.permute.xlu0 %714 }
 0x171   : > { %v762_v34 = vsel %vm734_vm1, %v715_v63, %v717_v58  ;;  %v1059_v54 = vrot.slane %v962_v0, 2 }
 0x172   : > { %v910_v61 = vsel %vm863_vm2, %v907_v17, %v909_v18  ;;  %v826_v35 = vadd.f32 %v762_v34, %v1802_v36 }
 0x173   : > { %v963_v8 = vadd.f32 %v910_v61, %v824_v29 }
 0x174   : > { %v911_v51 = vrot.slane %v826_v35, 1  ;;  %v721_v4 = vpop.permute.xlu1 %720  ;;  %v719_v20 = vpop.permute.xlu0 %718 }
 0x175   : > { %v1060_v37 = vrot.slane %v963_v8, 2  ;;  %v763_v2 = vsel %vm734_vm1, %v719_v20, %v721_v4 }
 0x176   : > { %v912_v33 = vsel %vm863_vm2, %v909_v18, %v911_v51  ;;  %v982_v3 = vadd.f32 %v911_v51, %v826_v35  ;;  %v827_v39 = vadd.f32 %v763_v2, %v1810_v11 }
 0x177   : > { %v1061_v49 = vsel %vm1016_vm3, %v1059_v54, %v1060_v37  ;;  %v964_v1 = vadd.f32 %v912_v33, %v825_v32 }
 0x178   : > { %v1115_v21 = vadd.f32 %v1061_v49, %v962_v0  ;;  %v1064_v38 = vrot.slane %v982_v3, 2  ;;  %v725_v36 = vpop.permute.xlu1 %724  ;;  %v723_v23 = vpop.permute.xlu0 %722  ;;  %v913_v52 = vrot.slane %v827_v39, 1 }
 0x179   : > { %v1062_v53 = vrot.slane %v964_v1, 2  ;;  %v764_v22 = vsel %vm734_vm1, %v723_v23, %v725_v36 }
 0x17a   : > { %1139 = vst [vmem:[%s1855_s18 + $0x90] sm:$0xff] %v1115_v21  ;;  %v828_v40 = vadd.f32 %v764_v22, %v1818_v13 }
 0x17b   : > { %v1063_v41 = vsel %vm1016_vm3, %v1060_v37, %v1062_v53  ;;  %v1065_v24 = vsel %vm1016_vm3, %v1062_v53, %v1064_v38 }
 0x17c   : > { %v1116_v60 = vadd.f32 %v1063_v41, %v963_v8  ;;  %v1117_v25 = vadd.f32 %v1065_v24, %v964_v1  ;;  %v914_v42 = vrot.slane %v828_v40, 1  ;;  %v729_v43 = vpop.permute.xlu1 %728  ;;  %v727_v11 = vpop.permute.xlu0 %726 }
 0x17d   : > { %v765_v26 = vsel %vm734_vm1, %v727_v11, %v729_v43 }
 0x17e   : > { %1140 = vst [vmem:[%s1855_s18 + $0x98] sm:$0xff] %v1116_v60  ;;  %1141 = vst [vmem:[%s1855_s18 + $0xa0] sm:$0xff] %v1117_v25  ;;  %v915_v57 = vsel %vm863_vm2, %v913_v52, %v914_v42  ;;  %v829_v62 = vadd.f32 %v765_v26, %v1827_v47 }
 0x17f   : > { %v965_v44 = vadd.f32 %v915_v57, %v827_v39 }
 0x180   : > { %v916_v15 = vrot.slane %v829_v62, 1  ;;  %v733_v13 = vpop.permute.xlu1 %732  ;;  %v731_v59 = vpop.permute.xlu0 %730 }
 0x181   : > { %v766_v45 = vsel %vm734_vm1, %v731_v59, %v733_v13  ;;  %v1066_v12 = vrot.slane %v965_v44, 2 }
 0x182   : > { %v917_v27 = vsel %vm863_vm2, %v914_v42, %v916_v15  ;;  %v830_v50 = vadd.f32 %v766_v45, %v1838_v19 }
 0x183   : > { %v966_v16 = vadd.f32 %v917_v27, %v828_v40 }
 0x184   : > { %v918_v14 = vrot.slane %v830_v50, 1 }
 0x185   : > { %v1067_v28 = vrot.slane %v966_v16, 2 }
 0x186   : > { %v919_v55 = vsel %vm863_vm2, %v916_v15, %v918_v14  ;;  %v983_v47 = vadd.f32 %v918_v14, %v830_v50 }
 0x187   : > { %v1068_v46 = vsel %vm1016_vm3, %v1066_v12, %v1067_v28  ;;  %v967_v29 = vadd.f32 %v919_v55, %v829_v62 }
 0x188   : > { %v1118_v5 = vadd.f32 %v1068_v46, %v965_v44  ;;  %v1071_v30 = vrot.slane %v983_v47, 2 }
 0x189   : > { %v1069_v9 = vrot.slane %v967_v29, 2 }
 0x18a   : > { %1142 = vst [vmem:[%s1855_s18 + $0xa8] sm:$0xff] %v1118_v5 }
 0x18b   : > { %v1070_v31 = vsel %vm1016_vm3, %v1067_v28, %v1069_v9  ;;  %v1072_v19 = vsel %vm1016_vm3, %v1069_v9, %v1071_v30 }
 0x18c   : > { %v1119_v48 = vadd.f32 %v1070_v31, %v966_v16  ;;  %v1120_v17 = vadd.f32 %v1072_v19, %v967_v29 }
 0x18e   : > { %1143 = vst [vmem:[%s1855_s18 + $0xb0] sm:$0xff] %v1119_v48  ;;  %1144 = vst [vmem:[%s1855_s18 + $0xb8] sm:$0xff] %v1120_v17 }
 0x18f PF: > { %s11_s6 = sadd.s32 1, %s1233_s6  }
 0x190   : > { %p8_p4 = scmp.ge.s32.totalorder %s11_s6, 4  }
 0x192   :  { %10 = sbr.rel (!%p8_p4) target bundleno = 1 (0x1), region = 54 }

</bundles_post_ra>
